<compile_context>
chip_gen: v7x
topology: tpu7x:2x2x1
jax: 0.10.0
libtpu: 0.0.40
codegen_flags: <defaults>
</compile_context>

<pallas_src>
import functools
import inspect
import math

import jax
import jax.numpy as jnp
from jax import lax
from jax.experimental import pallas as pl
from jax.experimental.pallas import tpu as pltpu


# ---------------------------------------------------------------------------
# Kernel
# ---------------------------------------------------------------------------
def encoder_kernel(x_ref, wqkv_ref, bqkv_ref, wo_ref, bo_ref, a2_ref, b2_ref,
                   o_ref, attn_ref, *, h, d_k, seq, batch_tile, eps):
    """One grid step == `batch_tile` batch elements (rows = batch_tile * seq)."""
    D = h * d_k
    rows = batch_tile * seq

    x = x_ref[...]                                   # [R, D] (compute dtype)

    # Fused QKV projection: ONE MXU matmul for the whole row tile.
    # 1/sqrt(d_k) is pre-folded into the Wq / bq columns on the host.
    qkv = (jnp.dot(x, wqkv_ref[...], preferred_element_type=jnp.float32)
           + bqkv_ref[...])                          # [R, 3D] f32

    for head in range(h):                            # static, small
        off = head * d_k
        qh = qkv[:, off:off + d_k].reshape(batch_tile, seq, d_k)
        kh = qkv[:, D + off:D + off + d_k].reshape(batch_tile, seq, d_k)
        vh = qkv[:, 2 * D + off:2 * D + off + d_k].reshape(batch_tile, seq, d_k)

        # scores[b, q, k] = qh[b, q, :] . kh[b, k, :]: contraction on the LAST
        # dims with a batch dim, so there is no materialized kh transpose and
        # no Python loop over the batch tile.
        scores = lax.dot_general(qh, kh, (((2,), (2,)), ((0,), (0,))),
                                 preferred_element_type=jnp.float32)  # [bt,S,S]

        # Numerically-stable softmax, exact division (f32 VPU/EUP math).
        m = jnp.max(scores, axis=-1, keepdims=True)
        e = jnp.exp(scores - m)
        p = e / jnp.sum(e, axis=-1, keepdims=True)

        attn = lax.dot_general(p, vh, (((2,), (1,)), ((0,), (0,))),
                               preferred_element_type=jnp.float32)    # [bt,S,dk]

        # Stage this head's output into its lane slice of the scratch; the
        # output projection is ONE deep-K matmul below (no per-head shallow-K
        # dots, no head concat, no list of live accumulators).
        attn_ref[:, off:off + d_k] = (
            attn.reshape(rows, d_k).astype(attn_ref.dtype))

    # Output projection: a single [R, D] x [D, D] MXU matmul.
    y = (jnp.dot(attn_ref[...], wo_ref[...], preferred_element_type=jnp.float32)
         + bo_ref[...])                              # [R, D] f32

    # Encoder final LayerNorm (torch semantics: unbiased std, x / (std + eps)).
    mean = jnp.mean(y, axis=-1, keepdims=True)
    var = jnp.sum((y - mean) ** 2, axis=-1, keepdims=True) / (D - 1)
    y = a2_ref[...] * (y - mean) / (jnp.sqrt(var) + eps) + b2_ref[...]

    o_ref[...] = y.astype(o_ref.dtype)


# ---------------------------------------------------------------------------
# Wrapper
# ---------------------------------------------------------------------------
def _supports_pipeline_mode():
    try:
        return (hasattr(pl, "Buffered")
                and "pipeline_mode" in inspect.signature(pl.BlockSpec).parameters)
    except (TypeError, ValueError):
        return False


_HAS_PIPELINE_MODE = _supports_pipeline_mode()


def _constant_block_spec(shape):
    """BlockSpec for a grid-invariant (weight / bias) operand.

    The block index never changes, so the tile stays VMEM-resident across the
    whole grid; Buffered(1) disables the useless second buffer so resident
    weights don't double their VMEM footprint (matters at production d_model
    on v7x's 64 MiB VMEM and under v5e's 16 MiB default scoped limit).
    """
    index_map = lambda i, _shape=shape: (0,) * len(_shape)
    if _HAS_PIPELINE_MODE:
        return pl.BlockSpec(shape, index_map, pipeline_mode=pl.Buffered(1))
    return pl.BlockSpec(shape, index_map)


def _pick_batch_tile(B, S, target_rows=512):
    """Rows per grid step sized by VMEM (~target_rows), not by B.

    Keeps >= 2 grid steps when B >= 2 (second TensorCore on v7x) and picks a
    divisor of B so every grid step is full.
    """
    cap = max(1, target_rows // max(S, 1))
    if B >= 2:
        cap = min(cap, max(1, B // 2))   # never collapse to a single grid step
    bt = min(B, cap)
    while B % bt:
        bt -= 1
    return bt


def encoder_forward(x, params, *, h, batch_tile=None, compute_dtype=None,
                    eps=1e-6):
    """x: [B, S, D] float32.  params: dict of pre-transposed ([d_in, d_out]) weights.

    compute_dtype: dtype of the MXU operands (activations + weights).  Use
    jnp.bfloat16 at production d_model on v5e/v6e/v7x (bf16-native MXU, half
    the HBM/VMEM traffic); softmax / LayerNorm math stays f32 regardless.
    """
    B, S, D = x.shape
    assert D % h == 0
    d_k = D // h
    if compute_dtype is None:
        compute_dtype = x.dtype

    # Host-side one-time packing of the fused QKV weight / bias, with the
    # 1/sqrt(d_k) attention scale folded into the Wq columns and bq.
    scale = 1.0 / math.sqrt(d_k)
    wqkv = jnp.concatenate(
        [params["wq"] * scale, params["wk"], params["wv"]],
        axis=1).astype(compute_dtype)                              # [D, 3D]
    bqkv = jnp.concatenate(
        [params["bq"] * scale, params["bk"], params["bv"]]
    ).reshape(1, 3 * D).astype(jnp.float32)                        # f32 (added post-MXU)
    wo = params["wo"].astype(compute_dtype)                        # [D, D]
    bo = params["bo"].reshape(1, D).astype(jnp.float32)
    a2 = params["a2"].reshape(1, D).astype(jnp.float32)
    b2 = params["b2"].reshape(1, D).astype(jnp.float32)

    if batch_tile is None:
        batch_tile = _pick_batch_tile(B, S)
    assert B % batch_tile == 0
    rows = batch_tile * S
    if rows % 8 and rows != B * S:
        # Row tile must be sublane-aligned or equal to the full array extent.
        batch_tile, rows = B, B * S
    grid = (B // batch_tile,)

    x2 = x.reshape(B * S, D).astype(compute_dtype)   # batch folded into matmul rows

    act_spec = pl.BlockSpec((rows, D), lambda i: (i, 0))
    out_spec = pl.BlockSpec((rows, D), lambda i: (i, 0))

    kernel = functools.partial(encoder_kernel, h=h, d_k=d_k, seq=S,
                               batch_tile=batch_tile, eps=eps)

    out = pl.pallas_call(
        kernel,
        out_shape=jax.ShapeDtypeStruct((B * S, D), x.dtype),
        grid_spec=pltpu.PrefetchScalarGridSpec(
            num_scalar_prefetch=0,
            grid=grid,
            in_specs=[
                act_spec,
                _constant_block_spec((D, 3 * D)),    # fused QKV weight (resident)
                _constant_block_spec((1, 3 * D)),    # fused QKV bias
                _constant_block_spec((D, D)),        # Wo (resident)
                _constant_block_spec((1, D)),        # bo
                _constant_block_spec((1, D)),        # LayerNorm a_2
                _constant_block_spec((1, D)),        # LayerNorm b_2
            ],
            out_specs=out_spec,
            scratch_shapes=[pltpu.VMEM((rows, D), compute_dtype)],  # head staging
        ),
        compiler_params=pltpu.CompilerParams(
            dimension_semantics=("parallel",),
            vmem_limit_bytes=48 * 1024 * 1024),
    )(x2, wqkv, bqkv, wo, bo, a2, b2)

    return out.reshape(B, S, D)


# ---------------------------------------------------------------------------
# Pure-JAX reference (mirrors the PyTorch modules, eval mode, no mask)
# ---------------------------------------------------------------------------
def reference_encoder(x, params, *, h, eps=1e-6):
    B, S, D = x.shape
    d_k = D // h
    lin = lambda t, w, b: t @ w + b

    q = lin(x, params["wq"], params["bq"]).reshape(B, S, h, d_k).transpose(0, 2, 1, 3)
    k = lin(x, params["wk"], params["bk"]).reshape(B, S, h, d_k).transpose(0, 2, 1, 3)
    v = lin(x, params["wv"], params["bv"]).reshape(B, S, h, d_k).transpose(0, 2, 1, 3)

    scores = jnp.einsum("bhqd,bhkd->bhqk", q, k) / math.sqrt(d_k)
    p = jax.nn.softmax(scores, axis=-1)
    y = jnp.einsum("bhqk,bhkd->bhqd", p, v).transpose(0, 2, 1, 3).reshape(B, S, D)
    y = lin(y, params["wo"], params["bo"])

    # Encoder's final LayerNorm (torch std is unbiased; module divides by std+eps).
    mean = y.mean(-1, keepdims=True)
    std = jnp.sqrt(((y - mean) ** 2).sum(-1, keepdims=True) / (D - 1))
    return params["a2"] * (y - mean) / (std + eps) + params["b2"]


def init_params(key, d_model):
    """Deterministic nn.Linear-style init; weights stored as [d_in, d_out]."""
    bound = 1.0 / math.sqrt(d_model)
    keys = jax.random.split(key, 10)
    params = {}
    names = ["wq", "bq", "wk", "bk", "wv", "bv", "wo", "bo"]
    for i, name in enumerate(names):
        shape = (d_model, d_model) if name.startswith("w") else (d_model,)
        params[name] = jax.random.uniform(keys[i], shape, jnp.float32,
                                          minval=-bound, maxval=bound)
    # LayerNorm parameters (perturbed from ones/zeros so the test exercises them)
    params["a2"] = 1.0 + 0.1 * jax.random.normal(keys[8], (d_model,), jnp.float32)
    params["b2"] = 0.1 * jax.random.normal(keys[9], (d_model,), jnp.float32)
    return params


if __name__ == "__main__":
    B, S, D, H = 2, 8, 32, 4   # batch, slate_size, d_model, heads

    root = jax.random.PRNGKey(0)
    k_x, k_p = jax.random.split(root)
    x = jax.random.normal(k_x, (B, S, D), jnp.float32)
    params = init_params(k_p, D)

    ref = reference_encoder(x, params, h=H)

    # f32 path: must match the PyTorch-style reference closely (exact softmax
    # division; tolerance only covers MXU f32 pass rounding on hardware).
    out = jax.block_until_ready(encoder_forward(x, params, h=H))
    assert out.shape == (B, S, D)
    err = float(jnp.max(jnp.abs(out - ref)))
    assert jnp.allclose(out, ref, atol=5e-3, rtol=5e-3), (
        f"f32 mismatch vs reference: max abs diff {err}")

    # bf16 compute path (MXU-native on v5e/v6e/v7x); softmax/LayerNorm math is
    # still f32, so the remaining error is bf16 quantization of x / weights.
    out_bf16 = jax.block_until_ready(
        encoder_forward(x, params, h=H, compute_dtype=jnp.bfloat16))
    err_bf16 = float(jnp.max(jnp.abs(out_bf16 - ref)))
    assert err_bf16 < 0.1, f"bf16 path mismatch vs reference: {err_bf16}"

    print("KERNEL_OK")
</pallas_src>

<mosaic_0001>
module attributes {stable_mosaic.version = 11 : i64} {
  func.func @encoder_kernel(%arg0: i32, %arg1: memref<8x32xf32, #tpu.memory_space<vmem>>, %arg2: memref<32x96xf32, #tpu.memory_space<vmem>>, %arg3: memref<1x96xf32, #tpu.memory_space<vmem>>, %arg4: memref<32x32xf32, #tpu.memory_space<vmem>>, %arg5: memref<1x32xf32, #tpu.memory_space<vmem>>, %arg6: memref<1x32xf32, #tpu.memory_space<vmem>>, %arg7: memref<1x32xf32, #tpu.memory_space<vmem>>, %arg8: memref<8x32xf32, #tpu.memory_space<vmem>>, %arg9: memref<8x32xf32, #tpu.memory_space<vmem>>) attributes {dimension_semantics = [#tpu.dimension_semantics<parallel>], iteration_bounds = array<i64: 2>, scalar_prefetch = 0 : i64, scratch_operands = 1 : i64, tpu.core_type = #tpu.core_type<tc>, window_params = [{transform_indices = @transform_0, window_bounds = array<i64: 8, 32>}, {pipeline_mode = #tpu.pipeline_mode<synchronous>, transform_indices = @transform_1, window_bounds = array<i64: 32, 96>}, {pipeline_mode = #tpu.pipeline_mode<synchronous>, transform_indices = @transform_2, window_bounds = array<i64: 1, 96>}, {pipeline_mode = #tpu.pipeline_mode<synchronous>, transform_indices = @transform_3, window_bounds = array<i64: 32, 32>}, {pipeline_mode = #tpu.pipeline_mode<synchronous>, transform_indices = @transform_4, window_bounds = array<i64: 1, 32>}, {pipeline_mode = #tpu.pipeline_mode<synchronous>, transform_indices = @transform_5, window_bounds = array<i64: 1, 32>}, {pipeline_mode = #tpu.pipeline_mode<synchronous>, transform_indices = @transform_6, window_bounds = array<i64: 1, 32>}, {transform_indices = @transform_7, window_bounds = array<i64: 8, 32>}]} {
    %c0 = arith.constant 0 : index
    %c0_0 = arith.constant 0 : index
    %0 = vector.load %arg1[%c0, %c0_0] : memref<8x32xf32, #tpu.memory_space<vmem>>, vector<8x32xf32>
    %c0_1 = arith.constant 0 : index
    %c0_2 = arith.constant 0 : index
    %1 = vector.load %arg2[%c0_1, %c0_2] : memref<32x96xf32, #tpu.memory_space<vmem>>, vector<32x96xf32>
    %cst = arith.constant dense<0.000000e+00> : vector<8x96xf32>
    %2 = tpu.matmul %0, %1, %cst {dimension_numbers = #tpu.dot_dimension_numbers<[1], [0], [0], [1], [0, 0, 1, 1], [], []>} : vector<8x32xf32>, vector<32x96xf32>, vector<8x96xf32> -> vector<8x96xf32>
    %c0_3 = arith.constant 0 : index
    %c0_4 = arith.constant 0 : index
    %3 = vector.load %arg3[%c0_3, %c0_4] : memref<1x96xf32, #tpu.memory_space<vmem>>, vector<1x96xf32>
    %4 = vector.broadcast %3 : vector<1x96xf32> to vector<8x96xf32>
    %5 = arith.addf %2, %4 : vector<8x96xf32>
    %6 = vector.extract_strided_slice %5 {offsets = [0, 0], sizes = [8, 8], strides = [1, 1]} : vector<8x96xf32> to vector<8x8xf32>
    %7 = vector.shape_cast %6 : vector<8x8xf32> to vector<1x8x8xf32>
    %8 = vector.extract_strided_slice %5 {offsets = [0, 32], sizes = [8, 8], strides = [1, 1]} : vector<8x96xf32> to vector<8x8xf32>
    %9 = vector.shape_cast %8 : vector<8x8xf32> to vector<1x8x8xf32>
    %10 = vector.extract_strided_slice %5 {offsets = [0, 64], sizes = [8, 8], strides = [1, 1]} : vector<8x96xf32> to vector<8x8xf32>
    %11 = vector.shape_cast %10 : vector<8x8xf32> to vector<1x8x8xf32>
    %cst_5 = arith.constant dense<0.000000e+00> : vector<1x8x8xf32>
    %12 = tpu.matmul %7, %9, %cst_5 {dimension_numbers = #tpu.dot_dimension_numbers<[2], [2], [1], [1], [0, 0, 0, 1, 1, 1], [0], [0]>} : vector<1x8x8xf32>, vector<1x8x8xf32>, vector<1x8x8xf32> -> vector<1x8x8xf32>
    %cst_6 = arith.constant dense<0xFF800000> : vector<1x8xf32>
    %13 = vector.multi_reduction <maximumf>, %12, %cst_6 [2] : vector<1x8x8xf32> to vector<1x8xf32>
    %14 = vector.shape_cast %13 : vector<1x8xf32> to vector<1x8x1xf32>
    %15 = vector.broadcast %14 : vector<1x8x1xf32> to vector<1x8x8xf32>
    %16 = arith.subf %12, %15 : vector<1x8x8xf32>
    %17 = math.exp %16 : vector<1x8x8xf32>
    %cst_7 = arith.constant dense<0.000000e+00> : vector<1x8xf32>
    %18 = vector.multi_reduction <add>, %17, %cst_7 [2] : vector<1x8x8xf32> to vector<1x8xf32>
    %19 = vector.shape_cast %18 : vector<1x8xf32> to vector<1x8x1xf32>
    %20 = vector.broadcast %19 : vector<1x8x1xf32> to vector<1x8x8xf32>
    %21 = arith.divf %17, %20 : vector<1x8x8xf32>
    %cst_8 = arith.constant dense<0.000000e+00> : vector<1x8x8xf32>
    %22 = tpu.matmul %21, %11, %cst_8 {dimension_numbers = #tpu.dot_dimension_numbers<[2], [1], [1], [2], [0, 0, 0, 1, 1, 2], [0], [0]>} : vector<1x8x8xf32>, vector<1x8x8xf32>, vector<1x8x8xf32> -> vector<1x8x8xf32>
    %23 = vector.shape_cast %22 : vector<1x8x8xf32> to vector<8x8xf32>
    %c0_9 = arith.constant 0 : index
    %c0_10 = arith.constant 0 : index
    %24 = vector.load %arg9[%c0_9, %c0_10] : memref<8x32xf32, #tpu.memory_space<vmem>>, vector<8x8xf32>
    tpu.vector_store %arg9[%c0_9, %c0_10], %23 {strides = array<i32>} : memref<8x32xf32, #tpu.memory_space<vmem>>, vector<8x8xf32>,
    %25 = vector.extract_strided_slice %5 {offsets = [0, 8], sizes = [8, 8], strides = [1, 1]} : vector<8x96xf32> to vector<8x8xf32>
    %26 = vector.shape_cast %25 : vector<8x8xf32> to vector<1x8x8xf32>
    %27 = vector.extract_strided_slice %5 {offsets = [0, 40], sizes = [8, 8], strides = [1, 1]} : vector<8x96xf32> to vector<8x8xf32>
    %28 = vector.shape_cast %27 : vector<8x8xf32> to vector<1x8x8xf32>
    %29 = vector.extract_strided_slice %5 {offsets = [0, 72], sizes = [8, 8], strides = [1, 1]} : vector<8x96xf32> to vector<8x8xf32>
    %30 = vector.shape_cast %29 : vector<8x8xf32> to vector<1x8x8xf32>
    %cst_11 = arith.constant dense<0.000000e+00> : vector<1x8x8xf32>
    %31 = tpu.matmul %26, %28, %cst_11 {dimension_numbers = #tpu.dot_dimension_numbers<[2], [2], [1], [1], [0, 0, 0, 1, 1, 1], [0], [0]>} : vector<1x8x8xf32>, vector<1x8x8xf32>, vector<1x8x8xf32> -> vector<1x8x8xf32>
    %cst_12 = arith.constant dense<0xFF800000> : vector<1x8xf32>
    %32 = vector.multi_reduction <maximumf>, %31, %cst_12 [2] : vector<1x8x8xf32> to vector<1x8xf32>
    %33 = vector.shape_cast %32 : vector<1x8xf32> to vector<1x8x1xf32>
    %34 = vector.broadcast %33 : vector<1x8x1xf32> to vector<1x8x8xf32>
    %35 = arith.subf %31, %34 : vector<1x8x8xf32>
    %36 = math.exp %35 : vector<1x8x8xf32>
    %cst_13 = arith.constant dense<0.000000e+00> : vector<1x8xf32>
    %37 = vector.multi_reduction <add>, %36, %cst_13 [2] : vector<1x8x8xf32> to vector<1x8xf32>
    %38 = vector.shape_cast %37 : vector<1x8xf32> to vector<1x8x1xf32>
    %39 = vector.broadcast %38 : vector<1x8x1xf32> to vector<1x8x8xf32>
    %40 = arith.divf %36, %39 : vector<1x8x8xf32>
    %cst_14 = arith.constant dense<0.000000e+00> : vector<1x8x8xf32>
    %41 = tpu.matmul %40, %30, %cst_14 {dimension_numbers = #tpu.dot_dimension_numbers<[2], [1], [1], [2], [0, 0, 0, 1, 1, 2], [0], [0]>} : vector<1x8x8xf32>, vector<1x8x8xf32>, vector<1x8x8xf32> -> vector<1x8x8xf32>
    %42 = vector.shape_cast %41 : vector<1x8x8xf32> to vector<8x8xf32>
    %c0_15 = arith.constant 0 : index
    %c8 = arith.constant 8 : index
    %43 = vector.load %arg9[%c0_15, %c8] : memref<8x32xf32, #tpu.memory_space<vmem>>, vector<8x8xf32>
    tpu.vector_store %arg9[%c0_15, %c8], %42 {strides = array<i32>} : memref<8x32xf32, #tpu.memory_space<vmem>>, vector<8x8xf32>,
    %44 = vector.extract_strided_slice %5 {offsets = [0, 16], sizes = [8, 8], strides = [1, 1]} : vector<8x96xf32> to vector<8x8xf32>
    %45 = vector.shape_cast %44 : vector<8x8xf32> to vector<1x8x8xf32>
    %46 = vector.extract_strided_slice %5 {offsets = [0, 48], sizes = [8, 8], strides = [1, 1]} : vector<8x96xf32> to vector<8x8xf32>
    %47 = vector.shape_cast %46 : vector<8x8xf32> to vector<1x8x8xf32>
    %48 = vector.extract_strided_slice %5 {offsets = [0, 80], sizes = [8, 8], strides = [1, 1]} : vector<8x96xf32> to vector<8x8xf32>
    %49 = vector.shape_cast %48 : vector<8x8xf32> to vector<1x8x8xf32>
    %cst_16 = arith.constant dense<0.000000e+00> : vector<1x8x8xf32>
    %50 = tpu.matmul %45, %47, %cst_16 {dimension_numbers = #tpu.dot_dimension_numbers<[2], [2], [1], [1], [0, 0, 0, 1, 1, 1], [0], [0]>} : vector<1x8x8xf32>, vector<1x8x8xf32>, vector<1x8x8xf32> -> vector<1x8x8xf32>
    %cst_17 = arith.constant dense<0xFF800000> : vector<1x8xf32>
    %51 = vector.multi_reduction <maximumf>, %50, %cst_17 [2] : vector<1x8x8xf32> to vector<1x8xf32>
    %52 = vector.shape_cast %51 : vector<1x8xf32> to vector<1x8x1xf32>
    %53 = vector.broadcast %52 : vector<1x8x1xf32> to vector<1x8x8xf32>
    %54 = arith.subf %50, %53 : vector<1x8x8xf32>
    %55 = math.exp %54 : vector<1x8x8xf32>
    %cst_18 = arith.constant dense<0.000000e+00> : vector<1x8xf32>
    %56 = vector.multi_reduction <add>, %55, %cst_18 [2] : vector<1x8x8xf32> to vector<1x8xf32>
    %57 = vector.shape_cast %56 : vector<1x8xf32> to vector<1x8x1xf32>
    %58 = vector.broadcast %57 : vector<1x8x1xf32> to vector<1x8x8xf32>
    %59 = arith.divf %55, %58 : vector<1x8x8xf32>
    %cst_19 = arith.constant dense<0.000000e+00> : vector<1x8x8xf32>
    %60 = tpu.matmul %59, %49, %cst_19 {dimension_numbers = #tpu.dot_dimension_numbers<[2], [1], [1], [2], [0, 0, 0, 1, 1, 2], [0], [0]>} : vector<1x8x8xf32>, vector<1x8x8xf32>, vector<1x8x8xf32> -> vector<1x8x8xf32>
    %61 = vector.shape_cast %60 : vector<1x8x8xf32> to vector<8x8xf32>
    %c0_20 = arith.constant 0 : index
    %c16 = arith.constant 16 : index
    %62 = vector.load %arg9[%c0_20, %c16] : memref<8x32xf32, #tpu.memory_space<vmem>>, vector<8x8xf32>
    tpu.vector_store %arg9[%c0_20, %c16], %61 {strides = array<i32>} : memref<8x32xf32, #tpu.memory_space<vmem>>, vector<8x8xf32>,
    %63 = vector.extract_strided_slice %5 {offsets = [0, 24], sizes = [8, 8], strides = [1, 1]} : vector<8x96xf32> to vector<8x8xf32>
    %64 = vector.shape_cast %63 : vector<8x8xf32> to vector<1x8x8xf32>
    %65 = vector.extract_strided_slice %5 {offsets = [0, 56], sizes = [8, 8], strides = [1, 1]} : vector<8x96xf32> to vector<8x8xf32>
    %66 = vector.shape_cast %65 : vector<8x8xf32> to vector<1x8x8xf32>
    %67 = vector.extract_strided_slice %5 {offsets = [0, 88], sizes = [8, 8], strides = [1, 1]} : vector<8x96xf32> to vector<8x8xf32>
    %68 = vector.shape_cast %67 : vector<8x8xf32> to vector<1x8x8xf32>
    %cst_21 = arith.constant dense<0.000000e+00> : vector<1x8x8xf32>
    %69 = tpu.matmul %64, %66, %cst_21 {dimension_numbers = #tpu.dot_dimension_numbers<[2], [2], [1], [1], [0, 0, 0, 1, 1, 1], [0], [0]>} : vector<1x8x8xf32>, vector<1x8x8xf32>, vector<1x8x8xf32> -> vector<1x8x8xf32>
    %cst_22 = arith.constant dense<0xFF800000> : vector<1x8xf32>
    %70 = vector.multi_reduction <maximumf>, %69, %cst_22 [2] : vector<1x8x8xf32> to vector<1x8xf32>
    %71 = vector.shape_cast %70 : vector<1x8xf32> to vector<1x8x1xf32>
    %72 = vector.broadcast %71 : vector<1x8x1xf32> to vector<1x8x8xf32>
    %73 = arith.subf %69, %72 : vector<1x8x8xf32>
    %74 = math.exp %73 : vector<1x8x8xf32>
    %cst_23 = arith.constant dense<0.000000e+00> : vector<1x8xf32>
    %75 = vector.multi_reduction <add>, %74, %cst_23 [2] : vector<1x8x8xf32> to vector<1x8xf32>
    %76 = vector.shape_cast %75 : vector<1x8xf32> to vector<1x8x1xf32>
    %77 = vector.broadcast %76 : vector<1x8x1xf32> to vector<1x8x8xf32>
    %78 = arith.divf %74, %77 : vector<1x8x8xf32>
    %cst_24 = arith.constant dense<0.000000e+00> : vector<1x8x8xf32>
    %79 = tpu.matmul %78, %68, %cst_24 {dimension_numbers = #tpu.dot_dimension_numbers<[2], [1], [1], [2], [0, 0, 0, 1, 1, 2], [0], [0]>} : vector<1x8x8xf32>, vector<1x8x8xf32>, vector<1x8x8xf32> -> vector<1x8x8xf32>
    %80 = vector.shape_cast %79 : vector<1x8x8xf32> to vector<8x8xf32>
    %c0_25 = arith.constant 0 : index
    %c24 = arith.constant 24 : index
    %81 = vector.load %arg9[%c0_25, %c24] : memref<8x32xf32, #tpu.memory_space<vmem>>, vector<8x8xf32>
    tpu.vector_store %arg9[%c0_25, %c24], %80 {strides = array<i32>} : memref<8x32xf32, #tpu.memory_space<vmem>>, vector<8x8xf32>,
    %c0_26 = arith.constant 0 : index
    %c0_27 = arith.constant 0 : index
    %82 = vector.load %arg9[%c0_26, %c0_27] : memref<8x32xf32, #tpu.memory_space<vmem>>, vector<8x32xf32>
    %c0_28 = arith.constant 0 : index
    %c0_29 = arith.constant 0 : index
    %83 = vector.load %arg4[%c0_28, %c0_29] : memref<32x32xf32, #tpu.memory_space<vmem>>, vector<32x32xf32>
    %cst_30 = arith.constant dense<0.000000e+00> : vector<8x32xf32>
    %84 = tpu.matmul %82, %83, %cst_30 {dimension_numbers = #tpu.dot_dimension_numbers<[1], [0], [0], [1], [0, 0, 1, 1], [], []>} : vector<8x32xf32>, vector<32x32xf32>, vector<8x32xf32> -> vector<8x32xf32>
    %c0_31 = arith.constant 0 : index
    %c0_32 = arith.constant 0 : index
    %85 = vector.load %arg5[%c0_31, %c0_32] : memref<1x32xf32, #tpu.memory_space<vmem>>, vector<1x32xf32>
    %86 = vector.broadcast %85 : vector<1x32xf32> to vector<8x32xf32>
    %87 = arith.addf %84, %86 : vector<8x32xf32>
    %cst_33 = arith.constant dense<0.000000e+00> : vector<8xf32>
    %88 = vector.multi_reduction <add>, %87, %cst_33 [1] : vector<8x32xf32> to vector<8xf32>
    %89 = vector.shape_cast %88 : vector<8xf32> to vector<8x1xf32>
    %cst_34 = arith.constant 3.200000e+01 : f32
    %90 = vector.broadcast %cst_34 : f32 to vector<8x1xf32>
    %91 = arith.divf %89, %90 : vector<8x1xf32>
    %92 = vector.broadcast %91 : vector<8x1xf32> to vector<8x32xf32>
    %93 = arith.subf %87, %92 : vector<8x32xf32>
    %94 = arith.mulf %93, %93 : vector<8x32xf32>
    %cst_35 = arith.constant dense<0.000000e+00> : vector<8xf32>
    %95 = vector.multi_reduction <add>, %94, %cst_35 [1] : vector<8x32xf32> to vector<8xf32>
    %96 = vector.shape_cast %95 : vector<8xf32> to vector<8x1xf32>
    %cst_36 = arith.constant 3.100000e+01 : f32
    %97 = vector.broadcast %cst_36 : f32 to vector<8x1xf32>
    %98 = arith.divf %96, %97 : vector<8x1xf32>
    %c0_37 = arith.constant 0 : index
    %c0_38 = arith.constant 0 : index
    %99 = vector.load %arg6[%c0_37, %c0_38] : memref<1x32xf32, #tpu.memory_space<vmem>>, vector<1x32xf32>
    %100 = vector.broadcast %91 : vector<8x1xf32> to vector<8x32xf32>
    %101 = arith.subf %87, %100 : vector<8x32xf32>
    %102 = vector.broadcast %99 : vector<1x32xf32> to vector<8x32xf32>
    %103 = arith.mulf %102, %101 : vector<8x32xf32>
    %104 = math.sqrt %98 : vector<8x1xf32>
    %cst_39 = arith.constant 9.99999997E-7 : f32
    %105 = vector.broadcast %cst_39 : f32 to vector<8x1xf32>
    %106 = arith.addf %104, %105 : vector<8x1xf32>
    %107 = vector.broadcast %106 : vector<8x1xf32> to vector<8x32xf32>
    %108 = arith.divf %103, %107 : vector<8x32xf32>
    %c0_40 = arith.constant 0 : index
    %c0_41 = arith.constant 0 : index
    %109 = vector.load %arg7[%c0_40, %c0_41] : memref<1x32xf32, #tpu.memory_space<vmem>>, vector<1x32xf32>
    %110 = vector.broadcast %109 : vector<1x32xf32> to vector<8x32xf32>
    %111 = arith.addf %108, %110 : vector<8x32xf32>
    %c0_42 = arith.constant 0 : index
    %c0_43 = arith.constant 0 : index
    %112 = vector.load %arg8[%c0_42, %c0_43] : memref<8x32xf32, #tpu.memory_space<vmem>>, vector<8x32xf32>
    tpu.vector_store %arg8[%c0_42, %c0_43], %111 {strides = array<i32>} : memref<8x32xf32, #tpu.memory_space<vmem>>, vector<8x32xf32>,
    return
  }
  func.func @transform_0(%arg0: i32) -> (i32, i32) {
    %c0_i32 = arith.constant 0 : i32
    %c0_i32_0 = arith.constant 0 : i32
    return %arg0, %c0_i32 : i32, i32
  }
  func.func @transform_1(%arg0: i32) -> (i32, i32) {
    %c0_i32 = arith.constant 0 : i32
    %c0_i32_0 = arith.constant 0 : i32
    %c0_i32_1 = arith.constant 0 : i32
    return %c0_i32, %c0_i32_0 : i32, i32
  }
  func.func @transform_2(%arg0: i32) -> (i32, i32) {
    %c0_i32 = arith.constant 0 : i32
    %c0_i32_0 = arith.constant 0 : i32
    %c0_i32_1 = arith.constant 0 : i32
    return %c0_i32, %c0_i32_0 : i32, i32
  }
  func.func @transform_3(%arg0: i32) -> (i32, i32) {
    %c0_i32 = arith.constant 0 : i32
    %c0_i32_0 = arith.constant 0 : i32
    %c0_i32_1 = arith.constant 0 : i32
    return %c0_i32, %c0_i32_0 : i32, i32
  }
  func.func @transform_4(%arg0: i32) -> (i32, i32) {
    %c0_i32 = arith.constant 0 : i32
    %c0_i32_0 = arith.constant 0 : i32
    %c0_i32_1 = arith.constant 0 : i32
    return %c0_i32, %c0_i32_0 : i32, i32
  }
  func.func @transform_5(%arg0: i32) -> (i32, i32) {
    %c0_i32 = arith.constant 0 : i32
    %c0_i32_0 = arith.constant 0 : i32
    %c0_i32_1 = arith.constant 0 : i32
    return %c0_i32, %c0_i32_0 : i32, i32
  }
  func.func @transform_6(%arg0: i32) -> (i32, i32) {
    %c0_i32 = arith.constant 0 : i32
    %c0_i32_0 = arith.constant 0 : i32
    %c0_i32_1 = arith.constant 0 : i32
    return %c0_i32, %c0_i32_0 : i32, i32
  }
  func.func @transform_7(%arg0: i32) -> (i32, i32) {
    %c0_i32 = arith.constant 0 : i32
    %c0_i32_0 = arith.constant 0 : i32
    return %arg0, %c0_i32 : i32, i32
  }
}

</mosaic_0001>

<bundles_post_ra>
// kernel: tpu_custom_call.1
= control target key start
LH: loop header
LB: loop body
LE: loop exit
PB: predicated region body
PF: predicated region fallthrough
CT: control target
= control target key end

     0   :  { %12 = vsyncpa [#allocation4], 0  ;;  %s2093_s0 = inlined_call_operand.hbm [shape: f32[16,32], index: 0, kind: input, shape index: {}]   ;;  %s2094_s1 = inlined_call_operand.hbm [shape: f32[32,96], index: 1, kind: input, shape index: {}]   ;;  %s2095_s2 = inlined_call_operand.vmem [shape: f32[1,96], index: 2, kind: input, shape index: {}]   ;;  %s2096_s3 = inlined_call_operand.hbm [shape: f32[32,32], index: 3, kind: input, shape index: {}]   ;;  %s2097_s4 = inlined_call_operand.vmem [shape: f32[1,32], index: 4, kind: input, shape index: {}]   ;;  %s2098_s5 = inlined_call_operand.vmem [shape: f32[1,32], index: 5, kind: input, shape index: {}]   ;;  %s2099_s6 = inlined_call_operand.vmem [shape: f32[1,32], index: 6, kind: input, shape index: {}]   ;;  %s2100_s7 = inlined_call_operand.hbm [shape: f32[16,32], index: 7, kind: output, shape index: {}]  }
   0x1   :  { %14 = vsyncpa [#allocation4 + $0x1], 0 }
   0x2   :  { %15 = vsyncpa [#allocation7], 0 }
   0x3   :  { %16 = vsyncpa [#allocation5], 0 }
   0x4   :  { %18 = vsyncpa [#allocation5 + $0x1], 0  ;;  %s1776_s24 = smov 0   ;;  %s1778_s25 = smov 0  }
   0x5   :  { %s1780_s26 = smov 0   ;;  %s1782_s27 = smov 0  }
   0x6 LB: > { %s1797_s28 = sadd.s32 4294967295, %s1711_s27   ;;  %s1315_s29 = sadd.s32 4294967294, %s1711_s27   ;;  %s1711_s27 = sphi %s1782_s27, %s2120_s27   ;;  %s1707_s26 = sphi %s1780_s26, %s2119_s26   ;;  %s1703_s25 = sphi %s1778_s25, %s2118_s25   ;;  %s1699_s24 = sphi %s1776_s24, %s2117_s24  }
   0x7   : > { %p44_p0 = scmp.ne.s32.totalorder %s1703_s25, %s1699_s24  ;;  %p2101_p1 = scmp.eq.s32.totalorder %s1797_s28, 0 }
   0x8   : > { %p200_p3 = scmp.eq.s32.totalorder %s1315_s29, 1  ;;  %p1316_p5 = scmp.ge.s32.totalorder %s1711_s27, 1 }
   0x9   : > { %p1806_p4 = por %p2101_p1, %p44_p0  ;;  %p207_p7 = scmp.lt.s32.totalorder %s1711_s27, 3 }
   0xa   : > { %p1811_p6 = por %p200_p3, %p44_p0  ;;  %s1713_s10 = smov [#allocation6]  }
   0xb   : > { %s2104_s30 = scalar_select %p1806_p4, 1, 0 }
   0xc   : > { %s2105_s8 = scalar_select %p1811_p6, 1, 0 }
   0xd   : > { %p1816_p8 = pnand %p1316_p5, %p207_p7  ;;  %s219_s11 = sshll.u32 %s1713_s10, 4  ;;  %s1820_s11 = int_to_ptr.vmem [resolvable:$true] %s219_s11 }
   0xe   : > { %s1714_s13 = smov [#allocation8]   ;;  %s1555_s17 = scalar_lea.hbm %s2094_s1, 512 }
   0xf   : > { %p1461_p9 = pneg %p1816_p8  ;;  %s235_s14 = sshll.u32 %s1714_s13, 4  ;;  %s1831_s14 = int_to_ptr.vmem [resolvable:$true] %s235_s14 }
  0x10   : > { %p1556_p12 = scmp.ne.s32.totalorder %s2094_s1, %s1555_s17  ;;  %p1562_p5 = scmp.lt.u32.totalorder %s1555_s17, %s2094_s1 }
  0x11   : > { %p1827_p11 = pnand %p1461_p9, %p2101_p1 }
  0x13   : > { %p1557_p13 = pneg %p1827_p11 }
  0x15   : > { %p1558_p0 = pnand %p1557_p13, %p1556_p12 }
  0x17   : > { %p1559_p3 = pneg %p1558_p0 }
  0x19   : > { %p1564_p7 = pnand %p1562_p5, %p1559_p3 }
  0x1b   : > { %1567 = shalt.err (!%p1564_p7)
}
  0x1c   : > { %s1568_s22 = scalar_lea.vmem %s1820_s11, 512  ;;  %p1576_p2 = scmp.lt.s32.totalorder %s1820_s11, %s1820_s11 }
  0x1d   : > { %p1569_p9 = scmp.ne.s32.totalorder %s1820_s11, %s1568_s22  ;;  %p1577_p12 = scmp.lt.s32.totalorder %s1568_s22, %s1568_s22 }
  0x1f   : > { %p1571_p10 = pnand %p1569_p9, %p1557_p13  ;;  %p1578_p0 = por %p1577_p12, %p1576_p2 }
  0x21   : > { %p1572_p1 = pneg %p1571_p10 }
  0x23   : > { %p1579_p6 = pnand %p1578_p0, %p1572_p1 }
  0x25   : > { %1582 = shalt.err (!%p1579_p6)
}
  0x26   : > { %s1715_s23 = smov 128   ;;  %s1716_s29 = smov 8  }
  0x27   : > { %1464 = dma.hbm_to_vmem [thread:$0]  (!%p1827_p11), %s2094_s1, 512, %s1820_s11, [#allocation7], %s1715_s23, %s1715_s23, %s1716_s29  }
  0x28   : > { %s1583_s17 = scalar_lea.hbm %s2096_s3, 512 }
  0x29   : > { %p1584_p2 = scmp.ne.s32.totalorder %s2096_s3, %s1583_s17  ;;  %p1590_p10 = scmp.lt.u32.totalorder %s1583_s17, %s2096_s3 }
  0x2b   : > { %p1586_p1 = pnand %p1584_p2, %p1557_p13 }
  0x2d   : > { %p1587_p6 = pneg %p1586_p1 }
  0x2f   : > { %p1592_p3 = pnand %p1590_p10, %p1587_p6 }
  0x31   : > { %1595 = shalt.err (!%p1592_p3)
}
  0x32   : > { %s1596_s11 = scalar_lea.vmem %s1831_s14, 512  ;;  %p1604_p12 = scmp.lt.s32.totalorder %s1831_s14, %s1831_s14 }
  0x33   : > { %p1597_p5 = scmp.ne.s32.totalorder %s1831_s14, %s1596_s11  ;;  %p1605_p0 = scmp.lt.s32.totalorder %s1596_s11, %s1596_s11 }
  0x35   : > { %p1599_p7 = pnand %p1597_p5, %p1557_p13  ;;  %p1606_p2 = por %p1605_p0, %p1604_p12 }
  0x37   : > { %p1600_p9 = pneg %p1599_p7 }
  0x39   : > { %p1607_p1 = pnand %p1606_p2, %p1600_p9 }
  0x3b   : > { %1610 = shalt.err (!%p1607_p1)
}
  0x3c   : > { %1467 = dma.hbm_to_vmem [thread:$0]  (!%p1827_p11), %s2096_s3, 512, %s1831_s14, [#allocation7], %s1715_s23, %s1715_s23, %s1716_s29  }
  0x3d   : > { %s1886_s13 = sadd.s32 1, %s1711_s27   ;;  %s31_s12 = sadd.s32 1, %s1707_s26 }
  0x3e   : > { %s28_s15 = ssub.s32 %s1711_s27, %s1886_s13  ;;  %p38_p13 = scmp.ne.s32.totalorder %s1707_s26, %s1703_s25 }
  0x3f   : > { %p29_p6 = scmp.eq.s32.totalorder %s28_s15, 0  ;;  %p39_p10 = scmp.eq.s32.totalorder %s1711_s27, 0 }
  0x40   : > { %p2108_p3 = scmp.eq.s32.totalorder %s1797_s28, 1  ;;  %p1478_p7 = scmp.lt.s32.totalorder %s1711_s27, 2 }
  0x41   : > { %s1902_s17 = scalar_select %p29_p6, %s1707_s26, %s31_s12  }
  0x42   : > { %p1896_p5 = por %p2108_p3, %p38_p13  ;;  %p40_p9 = por %p39_p10, %p38_p13 }
  0x43   : > { %s258_s18 = sand.u32 1, %s1707_s26   ;;  %s1321_s14 = sshll.u32 %s1711_s27, 7 }
  0x44   : > { %s2109_s16 = scalar_select %p1896_p5, 1, 0 }
  0x45   : > { %s1320_s19 = sshll.u32 %s258_s18, 3  ;;  %s1909_s20 = scalar_lea.hbm %s2093_s0, %s1321_s14 }
  0x46   : > { %s262_s21 = scalar_lea.vmem [#allocation3], %s1320_s19  ;;  %p1913_p11 = pnand %p1478_p7, %p40_p9 }
  0x47   : > { %s269_s11 = sshll.u32 %s262_s21, 4  ;;  %s259_s10 = scalar_lea.sflag [#allocation4], %s258_s18  ;;  %s1911_s11 = int_to_ptr.vmem [resolvable:$true] %s269_s11 }
  0x48   : > { %s1611_s12 = scalar_lea.hbm %s1909_s20, 128  ;;  %p1613_p0 = pneg %p1913_p11 }
  0x49   : > { %p1612_p12 = scmp.ne.s32.totalorder %s1909_s20, %s1611_s12  ;;  %s1616_s14 = scalar_lea.hbm %s2093_s0, 256 }
  0x4a   : > { %p1617_p13 = scmp.lt.u32.totalorder %s1909_s20, %s2093_s0  ;;  %p1618_p6 = scmp.lt.u32.totalorder %s1616_s14, %s1611_s12 }
  0x4b   : > { %p1614_p2 = pnand %p1613_p0, %p1612_p12  ;;  %p1620_p3 = scmp.lt.u32.totalorder %s1611_s12, %s1909_s20 }
  0x4c   : > { %p1619_p10 = por %p1618_p6, %p1617_p13 }
  0x4d   : > { %p1615_p1 = pneg %p1614_p2 }
  0x4e   : > { %p1621_p7 = por %p1620_p3, %p1619_p10 }
  0x50   : > { %p1622_p9 = pnand %p1621_p7, %p1615_p1 }
  0x52   : > { %1625 = shalt.err (!%p1622_p9)
}
  0x53   : > { %s1626_s18 = scalar_lea.vmem %s1911_s11, 128  ;;  %s1717_s21 = smov [#allocation3]  }
  0x54   : > { %p1627_p12 = scmp.ne.s32.totalorder %s1911_s11, %s1626_s18  ;;  %s1631_s15 = sshll.u32 %s1717_s21, 4  ;;  %s1632_s15 = int_to_ptr.vmem [resolvable:$false] %s1631_s15 }
  0x55   : > { %s1633_s19 = scalar_lea.vmem %s1632_s15, 256  ;;  %p1634_p4 = scmp.lt.s32.totalorder %s1911_s11, %s1632_s15 }
  0x56   : > { %p1629_p2 = pnand %p1627_p12, %p1613_p0  ;;  %p1635_p13 = scmp.lt.s32.totalorder %s1633_s19, %s1626_s18 }
  0x58   : > { %p1630_p5 = pneg %p1629_p2  ;;  %p1636_p6 = por %p1635_p13, %p1634_p4 }
  0x5a   : > { %p1637_p10 = pnand %p1636_p6, %p1630_p5 }
  0x5c   : > { %1640 = shalt.err (!%p1637_p10)
}
  0x5d   : > { %1471 = dma.hbm_to_vmem [thread:$0]  (!%p1913_p11), %s1909_s20, 128, %s1911_s11, %s259_s10  }
  0x5e   : > { %278 = sbr.rel (%p1816_p8) target bundleno = 2440 (0x988), region = 48  ;;  %s1945_s12 = sand.u32 (!%p1816_p8), 1, %s1703_s25  }
  0x5f   : > { %s1323_s14 = sshll.u32 (!%p1816_p8), %s1945_s12, 3  ;;  %s281_s23 = scalar_lea.sflag (!%p1816_p8), [#allocation4], %s1945_s12 }
  0x60   : > { %s284_s29 = scalar_lea.vmem (!%p1816_p8), [#allocation3], %s1323_s14  ;;  %p2111_p4 = scmp.ne.s32.totalorder (!%p1816_p8), %s2104_s30, 0 }
  0x65   : > { %1686 = dma.done.wait (%p2111_p4), %s281_s23, 128  }
  0x66   : > { %1688 = vsyncadd (%p2111_p4), %s281_s23, 4294967168  ;;  %p2112_p5 = scmp.eq.s32.totalorder %s1797_s28, 0 }
  0x68   : > { %1690 = dma.done.wait (%p2112_p5), [#allocation7], 1024   ;;  %p2113_p8 = pmov %p2112_p5 }
  0x69   : > { %v1718_v0 = vmov 0.0|0.0   ;;  %vm1719_vm0 = vmmov 0   ;;  %v1720_v1 = vmov 0.0   ;;  %v324_v2 = vld [vmem:[#allocation6] sm:$0xff]  ;;  %v325_v3 = vld [vmem:[#allocation6 + $0x8] sm:$0xff]  ;;  %v326_v4 = vld [vmem:[#allocation6 + $0x10] sm:$0xff] }
  0x6a   : > { %1692 = vsyncadd (%p2113_p8), [#allocation7], 4294966272  ;;  %1437 = vmatprep.subr.bf16.mxu0 %v1718_v0  ;;  %1383 = vmatprep.mubr.msk.f32.mxu0 %vm1719_vm0, %v1720_v1  ;;  %v1438_v5 = vpack.c.bf16 %v325_v3, %v324_v2  ;;  %v327_v6 = vld [vmem:[#allocation6 + $0x18] sm:$0xff]  ;;  %vm335_vm1 = vcmask 261120   ;;  %v1327_v9 = vld [vmem:[%s2095_s2] ss:$0 sm:$0xff] }
  0x6b   : > { %1386 = vmatprep.subr.mxu1 %v1720_v1  ;;  %1388 = vmatprep.mubr.msk.f32.mxu1 %vm1719_vm0, %v1720_v1  ;;  %v1441_v7 = vpack.c.bf16 %v327_v6, %v326_v4  ;;  %v323_v8 = vld [vmem:[%s284_s29] sm:$0xff]  ;;  %s1721_s20 = smov 64   ;;  %s1722_s11 = smov 96   ;;  %vm412_vm2 = vcmask 64512   ;;  %vm744_vm3 = vcmask 130112   ;;  %vm915_vm4 = vcmask 195712  }
  0x6c   : > { %1439 = vmatpush3.bf16.msra.mxu0 %v1438_v5  ;;  %s1723_s22 = smov 88   ;;  %s1724_s10 = smov 120   ;;  %vm1086_vm5 = vcmask 261312  }
  0x6d   : > { %1440 = vmatprep.subr.bf16.mxu0 %v1718_v0  ;;  %s1725_s18 = smov 80   ;;  %s1726_s21 = smov 72  }
  0x6e   : > { %s1727_s15 = smov 112   ;;  %s1728_s19 = smov 104  }
  0x6f   : > { %s1729_s23 = smov 56   ;;  %s1730_s29 = smov 48  }
  0x70   : > { %1442 = vmatpush3.bf16.msra.mxu0 %v1441_v7  ;;  %s1731_s30 = smov 40   ;;  %s1732_s9 = smov 8  }
  0x71   : > { %1406 = vmatprep.subr.mxu0 %v1720_v1  ;;  %p2114_p0 = scmp.ne.s32.totalorder %s2109_s16, 0 }
  0x73   : > { %1384 = vmatmul.mubr.msk.f32.vlgmr.msra.gmra.mrb[0].mxu0 %vm335_vm1, %v323_v8  ;;  %v1089_v8 = vld [vmem:[#allocation8] sm:$0xff] }
  0x74   : > { %1408 = vmatprep.mubr.msk.f32.mxu0 %vm1719_vm0, %v1720_v1 }
 0x146   : > { %v405_v10 = vpop.f32.mrb[0].mxu0 }
 0x147   : > { %v1973_v11 = vadd.f32 %v1327_v9, %v405_v10  ;;  %v1385_v12 = vpop.f32.mrb[1].mxu0  ;;  %v1090_v9 = vld [vmem:[#allocation8 + $0x8] sm:$0xff] }
 0x148   : > { %v1444_v10 = vpack.c.bf16 %v1090_v9, %v1089_v8  ;;  %v1092_v12 = vld [vmem:[#allocation8 + $0x18] sm:$0xff] }
 0x149   : > { %498 = vrot.lane.b32.xlu1 %v1973_v11, %s1721_s20  ;;  %410 = vrot.lane.b32.xlu0 %v1973_v11, %s1722_s11  ;;  %s1733_s20 = smov 16   ;;  %s1734_s11 = smov 24  }
 0x14d   : > { %577 = vrot.lane.b32.xlu1 %v1973_v11, %s1723_s22  ;;  %s1213_s22 = scalar_lea.sflag [#allocation5], %s1945_s12 }
 0x151   : > { %575 = vrot.lane.b32.xlu1 %v1973_v11, %s1724_s10 }
 0x155   : > { %748 = vrot.lane.b32.xlu1 %v1973_v11, %s1725_s18 }
 0x1bb   : > { %v499_v13 = vpop.permute.xlu1 %498  ;;  %v411_v14 = vpop.permute.xlu0 %410 }
 0x1bc   : > { %1387 = vmatpush3.xpose.msk.msra.mxu1 %vm412_vm2, %v411_v14 }
 0x1bd   : > { %1391 = vmatprep.subr.mxu1 %v1720_v1 }
 0x1bf   : > { %v578_v15 = vpop.permute.xlu1 %577  ;;  %1389 = vmatmul.mubr.msk.f32.vlgmr.msra.gmra.mrb[0].mxu1 %vm412_vm2, %v1973_v11 }
 0x1c0   : > { %1392 = vmatpush3.msra.mxu1 %v499_v13  ;;  %1393 = vmatprep.mubr.msk.f32.mxu1 %vm1719_vm0, %v1720_v1 }
 0x1c1   : > { %1396 = vmatprep.subr.mxu1 %v1720_v1 }
 0x1c3   : > { %v576_v16 = vpop.permute.xlu1 %575 }
 0x1c7   : > { %v749_v17 = vpop.permute.xlu1 %748 }
 0x1c8   : > { %1407 = vmatpush3.xpose.msk.msra.mxu0 %vm412_vm2, %v749_v17 }
 0x1c9   : > { %1416 = vmatprep.subr.mxu0 %v1720_v1 }
 0x292   : > { %v483_v18 = vpop.f32.mrb[0].mxu1 }
 0x293   : > { %v1390_v19 = vpop.f32.mrb[1].mxu1  ;;  %v487_v20 = vsel %vm412_vm2, %v483_v18, -inf }
 0x294   : > { %488 = vmax.xlane.f32.xlu0 %v487_v20 }
 0x2aa   : > { %919 = vrot.lane.b32.xlu0 %v1973_v11, %s1726_s21 }
 0x321   : > { %v489_v21 = vpop.xlane.xlu0 %488 }
 0x322   : > { %v490_v22 = vsub.f32 %v483_v18, %v489_v21 }
 0x324   : > { %v491_v23 = vmul.f32 1.442695, %v490_v22  ;;  %v1341_v22 = vld [vmem:[%s2097_s4] ss:$0 sm:$0xff] }
 0x325   : > { %v920_v28 = vpop.permute.xlu0 %919 }
 0x326   : > { %1535 = vpow2.f32 %v491_v23 }
 0x330   : > { %v1536_v24 = vpop.eup %1535 }
 0x331   : > { %v493_v25 = vsel %vm412_vm2, %v1536_v24, 0.0 }
 0x332   : > { %494 = vadd.xlane.f32.xlu1 %v493_v25 }
 0x343   : > { %746 = vrot.lane.b32.xlu1 %v1973_v11, %s1727_s15 }
 0x347   : > { %917 = vrot.lane.b32.xlu1 %v1973_v11, %s1728_s19 }
 0x3bf   : > { %v495_v26 = vpop.xlane.xlu1 %494 }
 0x3c0   : > { %1537 = vrcp.f32 %v495_v26 }
 0x3c3   : > { %v747_v27 = vpop.permute.xlu1 %746 }
 0x3c4   : > { %1409 = vmatmul.mubr.msk.f32.vlgmr.msra.gmra.mrb[2].mxu0 %vm412_vm2, %v747_v27 }
 0x3c5   : > { %1417 = vmatpush3.xpose.msk.msra.mxu0 %vm412_vm2, %v920_v28  ;;  %1418 = vmatprep.mubr.msk.f32.mxu0 %vm1719_vm0, %v1720_v1 }
 0x3c6   : > { %1443 = vmatprep.subr.bf16.mxu0 %v1718_v0 }
 0x3c7   : > { %v918_v29 = vpop.permute.xlu1 %917 }
 0x3c8   : > { %1419 = vmatmul.mubr.msk.f32.vlgmr.msra.gmra.mrb[4].mxu0 %vm412_vm2, %v918_v29 }
 0x3c9   : > { %1434 = vmatprep.mubr.msk.f32.mxu0 %vm1719_vm0, %v1720_v1  ;;  %1445 = vmatpush3.bf16.msra.mxu0 %v1444_v10 }
 0x3ca   : > { %v1538_v30 = vpop.eup %1537  ;;  %1446 = vmatprep.subr.bf16.mxu0 %v1718_v0 }
 0x3cb   : > { %v497_v31 = vmul.f32 %v1538_v30, %v1536_v24 }
 0x3cd   : > { %1394 = vmatmul.mubr.msk.f32.vlgmr.msra.gmra.mrb[2].mxu1 %vm412_vm2, %v497_v31 }
 0x3ce   : > { %1397 = vmatpush3.xpose.msk.msra.mxu1 %vm412_vm2, %v578_v15  ;;  %1398 = vmatprep.mubr.msk.f32.mxu1 %vm1719_vm0, %v1720_v1 }
 0x3cf   : > { %1401 = vmatprep.subr.mxu1 %v1720_v1 }
 0x3d1   : > { %1399 = vmatmul.mubr.msk.f32.vlgmr.msra.gmra.mrb[4].mxu1 %vm412_vm2, %v576_v16 }
 0x3d2   : > { %1403 = vmatprep.mubr.msk.f32.mxu1 %vm1719_vm0, %v1720_v1 }
 0x497   : > { %v820_v32 = vpop.f32.mrb[2].mxu0 }
 0x498   : > { %v1410_v33 = vpop.f32.mrb[3].mxu0  ;;  %v824_v34 = vsel %vm412_vm2, %v820_v32, -inf }
 0x499   : > { %825 = vmax.xlane.f32.xlu0 %v824_v34 }
 0x49b   : > { %v991_v35 = vpop.f32.mrb[4].mxu0 }
 0x49c   : > { %v1420_v36 = vpop.f32.mrb[5].mxu0  ;;  %v995_v42 = vsel %vm412_vm2, %v991_v35, -inf }
 0x4a0   : > { %v570_v37 = vpop.f32.mrb[2].mxu1 }
 0x4a1   : > { %574 = vst.msk [vmem:[#allocation2] sm:$0xff] %vm412_vm2, %v570_v37  ;;  %v1395_v38 = vpop.f32.mrb[3].mxu1 }
 0x4a4   : > { %v649_v39 = vpop.f32.mrb[4].mxu1 }
 0x4a5   : > { %v1400_v40 = vpop.f32.mrb[5].mxu1  ;;  %v653_v41 = vsel %vm412_vm2, %v649_v39, -inf }
 0x4a6   : > { %654 = vmax.xlane.f32.xlu1 %v653_v41  ;;  %v1343_v40 = vld [vmem:[%s2098_s5] ss:$0 sm:$0xff] }
 0x4aa   : > { %996 = vmax.xlane.f32.xlu1 %v995_v42 }
 0x526   : > { %v826_v43 = vpop.xlane.xlu0 %825 }
 0x527   : > { %v827_v44 = vsub.f32 %v820_v32, %v826_v43  ;;  %v1344_v43 = vld [vmem:[%s2099_s6] ss:$0 sm:$0xff] }
 0x529   : > { %v828_v45 = vmul.f32 1.442695, %v827_v44 }
 0x52b   : > { %1539 = vpow2.f32 %v828_v45 }
 0x533   : > { %v655_v46 = vpop.xlane.xlu1 %654 }
 0x534   : > { %v656_v54 = vsub.f32 %v649_v39, %v655_v46 }
 0x535   : > { %v1540_v47 = vpop.eup %1539 }
 0x536   : > { %v830_v48 = vsel %vm412_vm2, %v1540_v47, 0.0  ;;  %v657_v55 = vmul.f32 1.442695, %v656_v54 }
 0x537   : > { %831 = vadd.xlane.f32.xlu1 %v830_v48  ;;  %v997_v49 = vpop.xlane.xlu1 %996 }
 0x538   : > { %v998_v50 = vsub.f32 %v991_v35, %v997_v49 }
 0x53a   : > { %v999_v51 = vmul.f32 1.442695, %v998_v50 }
 0x53c   : > { %1541 = vpow2.f32 %v999_v51 }
 0x53d   : > { %1543 = vpow2.f32 %v657_v55 }
 0x546   : > { %v1542_v52 = vpop.eup %1541 }
 0x547   : > { %v1001_v53 = vsel %vm412_vm2, %v1542_v52, 0.0  ;;  %v1544_v56 = vpop.eup %1543 }
 0x548   : > { %664 = vrot.lane.b32.xlu1 %v1973_v11, %s1729_s23  ;;  %1002 = vadd.xlane.f32.xlu0 %v1001_v53  ;;  %v659_v57 = vsel %vm412_vm2, %v1544_v56, 0.0  ;;  %s1346_s23 = sshll.u32 %s1797_s28, 7  ;;  %s1735_s28 = smov [#allocation9]  }
 0x55e   : > { %835 = vrot.lane.b32.xlu0 %v1973_v11, %s1730_s29  ;;  %s322_s29 = scalar_lea.vmem [#allocation9], %s1323_s14  ;;  %s1645_s14 = sshll.u32 %s1735_s28, 4  ;;  %s1646_s14 = int_to_ptr.vmem [resolvable:$false] %s1645_s14 }
 0x55f   : > { %s1647_s18 = scalar_lea.vmem %s1646_s14, 256 }
 0x56c   : > { %660 = vadd.xlane.f32.xlu1 %v659_v57 }
 0x57d   : > { %1006 = vrot.lane.b32.xlu1 %v1973_v11, %s1731_s30  ;;  %v1091_v11 = vld [vmem:[#allocation8 + $0x10] sm:$0xff]  ;;  %s1226_s30 = sshll.u32 %s322_s29, 4  ;;  %s2050_s30 = int_to_ptr.vmem [resolvable:$true] %s1226_s30 }
 0x57e   : > { %v1447_v13 = vpack.c.bf16 %v1092_v12, %v1091_v11  ;;  %s1641_s10 = scalar_lea.vmem %s2050_s30, 128  ;;  %p1648_p7 = scmp.lt.s32.totalorder %s2050_s30, %s1646_s14 }
 0x57f   : > { %p1642_p11 = scmp.ne.s32.totalorder %s2050_s30, %s1641_s10  ;;  %p1649_p9 = scmp.lt.s32.totalorder %s1647_s18, %s1641_s10 }
 0x580   : > { %1448 = vmatpush3.bf16.msra.mxu0 %v1447_v13 }
 0x581   : > { %p1643_p1 = pnand %p1642_p11, %p2114_p0  ;;  %p1650_p12 = por %p1649_p9, %p1648_p7 }
 0x583   : > { %p1644_p3 = pneg %p1643_p1 }
 0x585   : > { %p1651_p2 = pnand %p1650_p12, %p1644_p3 }
 0x5c4   : > { %v832_v58 = vpop.xlane.xlu1 %831 }
 0x5c8   : > { %v665_v59 = vpop.permute.xlu1 %664 }
 0x5c9   : > { %1402 = vmatpush3.msra.mxu1 %v665_v59 }
 0x5ca   : > { %1411 = vmatprep.subr.mxu1 %v1720_v1 }
 0x5d5   : > { %v1003_v61 = vpop.xlane.xlu0 %1002 }
 0x5d9   : > { %v836_v3 = vpop.permute.xlu0 %835 }
 0x5f9   : > { %v661_v60 = vpop.xlane.xlu1 %660 }
 0x5fa   : > { %1545 = vrcp.f32 %v661_v60 }
 0x5fb   : > { %1547 = vrcp.f32 %v832_v58 }
 0x5fc   : > { %1549 = vrcp.f32 %v1003_v61 }
 0x5fd   : > { %v1007_v6 = vpop.permute.xlu1 %1006 }
 0x604   : > { %v1546_v62 = vpop.eup %1545 }
 0x605   : > { %v663_v63 = vmul.f32 %v1546_v62, %v1544_v56  ;;  %v1548_v2 = vpop.eup %1547 }
 0x606   : > { %v834_v4 = vmul.f32 %v1548_v2, %v1540_v47  ;;  %v1550_v5 = vpop.eup %1549 }
 0x607   : > { %1404 = vmatmul.mubr.msk.f32.vlgmr.msra.gmra.mrb[6].mxu1 %vm412_vm2, %v663_v63  ;;  %v1005_v7 = vmul.f32 %v1550_v5, %v1542_v52 }
 0x608   : > { %1412 = vmatpush3.msra.mxu1 %v836_v3  ;;  %1413 = vmatprep.mubr.msk.f32.mxu1 %vm1719_vm0, %v1720_v1 }
 0x609   : > { %1421 = vmatprep.subr.mxu1 %v1720_v1 }
 0x60b   : > { %1414 = vmatmul.mubr.msk.f32.vlgmr.msra.gmra.mrb[8].mxu1 %vm412_vm2, %v834_v4 }
 0x60c   : > { %1422 = vmatpush3.msra.mxu1 %v1007_v6  ;;  %1423 = vmatprep.mubr.msk.f32.mxu1 %vm1719_vm0, %v1720_v1 }
 0x60f   : > { %1424 = vmatmul.mubr.msk.f32.vlgmr.msra.gmra.mrb[10].mxu1 %vm412_vm2, %v1005_v7 }
 0x6da   : > { %v736_v14 = vpop.f32.mrb[6].mxu1 }
 0x6db   : > { %741 = vrot.lane.b32.xlu1 %v736_v14, %s1732_s9  ;;  %v1405_v15 = vpop.f32.mrb[7].mxu1 }
 0x6de   : > { %v907_v16 = vpop.f32.mrb[8].mxu1 }
 0x6df   : > { %912 = vrot.lane.b32.xlu0 %v907_v16, %s1733_s20  ;;  %v1415_v1 = vpop.f32.mrb[9].mxu1 }
 0x6e2   : > { %v1078_v17 = vpop.f32.mrb[10].mxu1 }
 0x6e3   : > { %1083 = vrot.lane.b32.xlu1 %v1078_v17, %s1734_s11  ;;  %v1425_v18 = vpop.f32.mrb[11].mxu1  ;;  %s2048_s11 = scalar_lea.hbm %s2100_s7, %s1346_s23 }
 0x74d   : > { %v742_v19 = vpop.permute.xlu1 %741 }
 0x74e   : > { %745 = vst.msk [vmem:[#allocation2] sm:$0xff] %vm744_vm3, %v742_v19 }
 0x751   : > { %v913_v20 = vpop.permute.xlu0 %912 }
 0x752   : > { %916 = vst.msk [vmem:[#allocation2] sm:$0xff] %vm915_vm4, %v913_v20 }
 0x755   : > { %v1084_v0 = vpop.permute.xlu1 %1083 }
 0x756   : > { %1087 = vst.msk [vmem:[#allocation2] sm:$0xff] %vm1086_vm5, %v1084_v0 }
 0x75d   : > { %v1088_v21 = vld [vmem:[#allocation2] sm:$0xff] }
 0x75e   : > { %1435 = vmatmul.mubr.msk.f32.vlgmr.msra.gmra.mrb[6].mxu0 %vm335_vm1, %v1088_v21 }
 0x831   : > { %v1169_v23 = vpop.f32.mrb[6].mxu0 }
 0x832   : > { %v1170_v24 = vadd.f32 %v1341_v22, %v1169_v23  ;;  %v1436_v25 = vpop.f32.mrb[7].mxu0 }
 0x834   : > { %v1173_v26 = vsel %vm335_vm1, %v1170_v24, 0.0 }
 0x835   : > { %1174 = vadd.xlane.f32.xlu0 %v1173_v26 }
 0x8c2   : > { %v1175_v27 = vpop.xlane.xlu0 %1174 }
 0x8c3   : > { %v1177_v28 = vmul.f32 0.03125, %v1175_v27 }
 0x8c5   : > { %v1178_v29 = vsub.f32 %v1170_v24, %v1177_v28 }
 0x8c7   : > { %v1179_v30 = vmul.f32 %v1178_v29, %v1178_v29  ;;  %v1192_v41 = vmul.f32 %v1343_v40, %v1178_v29 }
 0x8c9   : > { %v1180_v31 = vsel %vm335_vm1, %v1179_v30, 0.0 }
 0x8ca   : > { %1181 = vadd.xlane.f32.xlu1 %v1180_v31 }
 0x957   : > { %v1182_v32 = vpop.xlane.xlu1 %1181 }
 0x958   : > { %v1184_v33 = vmul.f32 0.032258064, %v1182_v32 }
 0x95a   : > { %1551 = vrsqrt.f32 %v1184_v33  ;;  %vm1195_vm6 = vcmp.eq.f32.partialorder %v1184_v33, inf  ;;  %v1198_v36 = vand.u32 2147483648, %v1184_v33  ;;  %vm1197_vm7 = vcmp.eq.f32.partialorder %v1184_v33, 0.0 }
 0x964   : > { %v1552_v34 = vpop.eup %1551 }
 0x965   : > { %v1194_v35 = vmul.f32 %v1552_v34, %v1184_v33 }
 0x967   : > { %v1196_v37 = vsel %vm1195_vm6, %v1184_v33, %v1194_v35 }
 0x968   : > { %v1199_v38 = vsel %vm1197_vm7, %v1198_v36, %v1196_v37 }
 0x969   : > { %v1200_v39 = vadd.f32 1e-06, %v1199_v38 }
 0x96b   : > { %1553 = vrcp.f32 %v1200_v39 }
 0x975   : > { %v1554_v42 = vpop.eup %1553 }
 0x976   : > { %v1202_v44 = vmul.f32 %v1554_v42, %v1192_v41 }
 0x978   : > { %v1210_v45 = vadd.f32 %v1344_v43, %v1202_v44 }
 0x97a   : > { %1211 = vst.msk [vmem:[%s322_s29] sm:$0xff] %vm335_vm1, %v1210_v45 }
 0x97b   : > { %1654 = shalt.err (!%p1651_p2)
}
 0x97c   : > { %s1655_s12 = scalar_lea.hbm %s2048_s11, 128  ;;  %s1659_s19 = scalar_lea.hbm %s2100_s7, 256 }
 0x97d   : > { %p1656_p13 = scmp.ne.s32.totalorder %s2048_s11, %s1655_s12  ;;  %p1660_p4 = scmp.lt.u32.totalorder %s2048_s11, %s2100_s7 }
 0x97e   : > { %p1661_p5 = scmp.lt.u32.totalorder %s1659_s19, %s1655_s12  ;;  %p1663_p11 = scmp.lt.u32.totalorder %s1655_s12, %s2048_s11 }
 0x97f   : > { %p1657_p6 = pnand %p1656_p13, %p2114_p0 }
 0x980   : > { %p1662_p8 = por %p1661_p5, %p1660_p4 }
 0x981   : > { %p1658_p10 = pneg %p1657_p6 }
 0x982   : > { %p1664_p1 = por %p1663_p11, %p1662_p8 }
 0x984   : > { %p1665_p3 = pnand %p1664_p1, %p1658_p10 }
 0x986   : > { %1668 = shalt.err (!%p1665_p3)
}
 0x987   : > { %1459 = dma.vmem_to_hbm [thread:$0]  (%p2114_p0), %s2050_s30, 128, %s2048_s11, %s1213_s22  }
 0x988 PF: > { %s1238_s9 = sand.u32 1, %s1699_s24   ;;  %p2115_p7 = scmp.ne.s32.totalorder %s2105_s8, 0 }
 0x989   : > { %p2116_p9 = scmp.ge.s32.totalorder %s1711_s27, 2  ;;  %s1239_s20 = scalar_lea.sflag [#allocation5], %s1238_s9 }
 0x98b   : > { %p1473_p12 = pnand %p2116_p9, %p2115_p7 }
 0x98d   : > { %1694 = dma.done.wait (!%p1473_p12), %s1239_s20, 128  }
 0x98e   : > { %1696 = vsyncadd (!%p1473_p12), %s1239_s20, 4294967168  ;;  %p21_p2 = scmp.ge.s32.totalorder %s1886_s13, 4   ;;  %s2117_s24 = smov %s1703_s25 }
 0x98f   : > { %s2118_s25 = smov %s1707_s26  ;;  %s2119_s26 = smov %s1902_s17 }
 0x990   : > { %s2120_s27 = smov %s1886_s13  ;;  %23 = sbr.rel (!%p21_p2) target bundleno = 6 (0x6), region = 101 }
 0x997   :  { %1244 = vsyncpa [#allocation4], 1 }
 0x998   :  { %1246 = vsyncpa [#allocation4 + $0x1], 1 }
 0x999   :  { %1247 = vsyncpa [#allocation7], 1 }
 0x99a   :  { %1248 = vsyncpa [#allocation5], 1 }
 0x99b   :  { %1250 = vsyncpa [#allocation5 + $0x1], 1 }

</bundles_post_ra>
